<compile_context>
chip_gen: v7x
topology: tpu7x:2x2x1
jax: 0.10.0
libtpu: 0.0.40
codegen_flags: <defaults>
</compile_context>

<pallas_src>
import functools

import jax
import jax.numpy as jnp
from jax import lax
from jax.experimental import pallas as pl
from jax.experimental.pallas import tpu as pltpu

_LANES = 128
_SUBLANES = 8


def _round_up(n, m):
    return ((n + m - 1) // m) * m


def _hia_fused_kernel(x_ref, y_ref, w1_ref, b1_ref, w2_ref, b2_ref, *out_refs):
    """Per batch-tile: node_emb = relu(x@W1+b1); z = <node_emb, w2> + b2;
    prob = sigmoid(z); per-element BCE-with-logits.  Outputs are lane-dense."""
    if len(out_refs) == 2:
        node_ref, slab_ref = out_refs
    else:
        node_ref = None
        (slab_ref,) = out_refs

    # Hidden layer on the MXU.  x / W1 may be bf16 (wrapper casts); accumulate f32.
    h = jnp.dot(x_ref[...], w1_ref[...], preferred_element_type=jnp.float32)
    h = jnp.maximum(h + b1_ref[...], 0.0)                         # (TB, H_pad) f32
    if node_ref is not None:
        node_ref[...] = h                                          # unmasked lane-dense store

    # Output head: N == 1 -> VPU multiply + XLU lane reduction, not a wasted MXU pass.
    z = jnp.sum(h * w2_ref[...], axis=-1, keepdims=True) + b2_ref[0, 0]   # (TB, 1)

    y = y_ref[...]                                                 # (TB, 1)

    # Shared EUP transcendental chain: exp(-|z|) feeds both sigmoid and BCE.
    e = jnp.exp(-jnp.abs(z))
    inv = pl.reciprocal(1.0 + e)                                   # EUP reciprocal
    prob = jnp.where(z >= 0.0, inv, e * inv)                       # stable sigmoid
    per = jnp.maximum(z, 0.0) - z * y + jnp.log1p(e)               # BCEWithLogits per element

    # Pack logits / prob / per-element loss into one lane-dense (TB, 128) slab:
    #   col 0 = pred logits, col 1 = sigmoid(pred), col 2 = per-element BCE, rest = 0.
    col = lax.broadcasted_iota(jnp.int32, slab_ref.shape, 1)
    slab_ref[...] = jnp.where(col == 0, z,
                    jnp.where(col == 1, prob,
                    jnp.where(col == 2, per, 0.0)))


def prepare_hia_params(w1, b1, w2, b2, *, use_bf16_gemm=False):
    """Pad / re-layout HIA_predict parameters once (hoist out of the MAML inner loop).

    w1: (D_in, H)  b1: (1, H)  w2: (H, 1)  b2: (1, 1)
    Returns (w1_p (D_in, H_pad) [optionally bf16], b1_p (1, H_pad) f32,
             w2_row (1, H_pad) f32, b2_s (1, 1) f32).
    """
    f32 = jnp.float32
    D_in, H = w1.shape
    H_pad = _round_up(H, _LANES)
    gemm_dt = jnp.bfloat16 if use_bf16_gemm else f32

    w1_p = jnp.zeros((D_in, H_pad), f32).at[:, :H].set(jnp.asarray(w1, f32))
    w1_p = w1_p.astype(gemm_dt)
    b1_p = jnp.zeros((1, H_pad), f32).at[:, :H].set(jnp.asarray(b1, f32).reshape(1, H))
    w2_row = jnp.zeros((1, H_pad), f32).at[:, :H].set(jnp.asarray(w2, f32).reshape(H, 1).T)
    b2_s = jnp.asarray(b2, f32).reshape(1, 1)
    return w1_p, b1_p, w2_row, b2_s


@functools.partial(
    jax.jit,
    static_argnames=("emb_dim", "tile_b", "return_node_emb", "use_bf16_gemm"))
def hia_predict_forward(x, y, w1_p, b1_p, w2_row, b2_s, *, emb_dim, tile_b=None,
                        return_node_emb=True, use_bf16_gemm=False):
    """Fused HIA_predict forward + sigmoid + BCE loss on TPU via Pallas.

    x: (B, D_in)  y: (B, 1) labels in {0,1}; parameters come from prepare_hia_params.
    Returns (pred_logits (B,1), node_emb (B,H) or None, prob (B,1), loss scalar).
    """
    f32 = jnp.float32
    B, D_in = x.shape
    H = emb_dim
    H_pad = w1_p.shape[1]
    gemm_dt = jnp.bfloat16 if use_bf16_gemm else f32

    # Batch tiling: one big tile for small B (no grid loop at all); 256-row tiles for
    # large B (fills the MXU M dimension, amortizes ~0.35 us per-step overhead, and
    # gives n_tiles >= 2 so the 'parallel' axis can shard across v7x's two TCs).
    B8 = _round_up(B, _SUBLANES)
    if tile_b is None:
        tile_b = B8 if B8 <= 512 else 256
    else:
        tile_b = _round_up(tile_b, _SUBLANES)
    B_pad = _round_up(B, tile_b)
    n_tiles = B_pad // tile_b

    # Pad only the batch axis.  K (D_in) stays unpadded: a block last-dim equal to the
    # full array dim is legal and Mosaic pads the contraction internally in VMEM.
    x_p = jnp.zeros((B_pad, D_in), gemm_dt).at[:B, :].set(x.astype(gemm_dt))
    y_p = jnp.zeros((B_pad, 1), f32).at[:B, :].set(y.astype(f32))

    in_specs = [
        pl.BlockSpec((tile_b, D_in), lambda i: (i, 0)),      # x       : tiled on B
        pl.BlockSpec((tile_b, 1), lambda i: (i, 0)),         # y       : tiled on B
        pl.BlockSpec((D_in, H_pad), lambda i: (0, 0)),       # W1      : VMEM-resident
        pl.BlockSpec((1, H_pad), lambda i: (0, 0)),          # b1      : VMEM-resident
        pl.BlockSpec((1, H_pad), lambda i: (0, 0)),          # w2 row  : VMEM-resident
        pl.BlockSpec(memory_space=pltpu.MemorySpace.SMEM),   # b2 scalar in SMEM
    ]

    out_specs = [pl.BlockSpec((tile_b, _LANES), lambda i: (i, 0))]   # packed slab
    out_shapes = [jax.ShapeDtypeStruct((B_pad, _LANES), f32)]
    if return_node_emb:
        out_specs = [pl.BlockSpec((tile_b, H_pad), lambda i: (i, 0))] + out_specs
        out_shapes = [jax.ShapeDtypeStruct((B_pad, H_pad), f32)] + out_shapes

    # VMEM budget: resident weights + double-buffered per-tile blocks.  Only set an
    # explicit limit when the conservative default scoped window (16 MiB on v5e) is
    # too small, and cap it below v7x's 64 MiB physical VMEM.
    gemm_item = 2 if use_bf16_gemm else 4
    weight_bytes = D_in * H_pad * gemm_item + 2 * H_pad * 4
    tile_bytes = tile_b * (D_in * gemm_item + 4 + _LANES * 4
                           + (H_pad * 4 if return_node_emb else 0))
    vmem_needed = 2 * (weight_bytes + tile_bytes) + (1 << 20)
    compiler_kwargs = dict(dimension_semantics=("parallel",))
    if vmem_needed > (16 << 20):
        compiler_kwargs["vmem_limit_bytes"] = int(min(2 * vmem_needed, 60 << 20))

    cost = pl.CostEstimate(
        flops=2 * B_pad * D_in * H_pad + 8 * B_pad * H_pad,
        transcendentals=3 * B_pad,
        bytes_accessed=(B_pad * D_in * gemm_item + 4 * B_pad + weight_bytes + 4
                        + 4 * B_pad * (_LANES + (H_pad if return_node_emb else 0))),
    )

    outs = pl.pallas_call(
        _hia_fused_kernel,
        out_shape=tuple(out_shapes),
        grid_spec=pltpu.PrefetchScalarGridSpec(
            num_scalar_prefetch=0,
            grid=(n_tiles,),
            in_specs=in_specs,
            out_specs=tuple(out_specs),
        ),
        compiler_params=pltpu.CompilerParams(**compiler_kwargs),
        cost_estimate=cost,
    )(x_p, y_p, w1_p, b1_p, w2_row, b2_s)

    if return_node_emb:
        node_pad, slab = outs
        node_emb = node_pad[:B, :H]
    else:
        (slab,) = outs
        node_emb = None

    pred = slab[:B, 0:1]
    prob = slab[:B, 1:2]
    per_elem = slab[:B, 2:3]
    # torch: loss = sum(BCEWithLogitsLoss(pred, y)) / pred.size(0)
    #        default reduction 'mean' over B, then /B  ->  sum(per_elem) / B^2
    loss = jnp.sum(per_elem) / float(B * B)
    return pred, node_emb, prob, loss


def _reference(x, y, w1, b1, w2, b2):
    h = jnp.maximum(x @ w1 + b1, 0.0)
    z = h @ w2 + b2
    per = jnp.maximum(z, 0.0) - z * y + jnp.log1p(jnp.exp(-jnp.abs(z)))
    b = x.shape[0]
    return z, h, jax.nn.sigmoid(z), jnp.sum(per) / (b * b)


if __name__ == "__main__":
    # Small shapes consistent with the module: a batch of molecule feature vectors,
    # emb_dim hidden width, single binary-logit head.  B=32 fits one grid step.
    B, D_IN, EMB_DIM = 32, 64, 32

    key = jax.random.PRNGKey(0)
    kx, ky, k1, k2, k3, k4 = jax.random.split(key, 6)

    x = jax.random.normal(kx, (B, D_IN), dtype=jnp.float32)           # batch['vec']
    y = jax.random.bernoulli(ky, 0.5, (B, 1)).astype(jnp.float32)     # batch['label']

    w1 = (jax.random.normal(k1, (D_IN, EMB_DIM), dtype=jnp.float32)
          * (1.0 / jnp.sqrt(D_IN)))
    b1 = jax.random.normal(k2, (1, EMB_DIM), dtype=jnp.float32) * 0.01
    w2 = (jax.random.normal(k3, (EMB_DIM, 1), dtype=jnp.float32)
          * (1.0 / jnp.sqrt(EMB_DIM)))
    b2 = jax.random.normal(k4, (1, 1), dtype=jnp.float32) * 0.01

    z_ref, h_ref, p_ref, l_ref = _reference(x, y, w1, b1, w2, b2)

    # ---- predict()/test() path: f32 GEMM, node_emb returned (exact check). ----
    w1_p, b1_p, w2_row, b2_s = prepare_hia_params(w1, b1, w2, b2, use_bf16_gemm=False)
    pred, node_emb, prob, loss = hia_predict_forward(
        x, y, w1_p, b1_p, w2_row, b2_s,
        emb_dim=EMB_DIM, return_node_emb=True, use_bf16_gemm=False)
    jax.block_until_ready((pred, node_emb, prob, loss))

    assert jnp.allclose(pred, z_ref, atol=1e-5, rtol=1e-4)
    assert jnp.allclose(node_emb, h_ref, atol=1e-5, rtol=1e-4)
    assert jnp.allclose(prob, p_ref, atol=1e-5, rtol=1e-4)
    assert jnp.allclose(loss, l_ref, atol=1e-5, rtol=1e-4)

    # ---- MAML-inner-loop path: bf16 GEMM inputs, node_emb write-back skipped. ----
    w1_b, b1_b, w2_b, b2_b = prepare_hia_params(w1, b1, w2, b2, use_bf16_gemm=True)
    pred2, node2, prob2, loss2 = hia_predict_forward(
        x, y, w1_b, b1_b, w2_b, b2_b,
        emb_dim=EMB_DIM, return_node_emb=False, use_bf16_gemm=True)
    jax.block_until_ready((pred2, prob2, loss2))

    assert node2 is None
    assert jnp.allclose(prob2, p_ref, atol=5e-2, rtol=5e-2)
    assert jnp.allclose(loss2, l_ref, atol=5e-2, rtol=5e-2)

    print("KERNEL_OK")
</pallas_src>

<mosaic_0001>
module attributes {stable_mosaic.version = 11 : i64} {
  func.func @_hia_fused_kernel(%arg0: i32, %arg1: memref<32x64xf32, #tpu.memory_space<vmem>>, %arg2: memref<32x1xf32, #tpu.memory_space<vmem>>, %arg3: memref<64x128xf32, #tpu.memory_space<vmem>>, %arg4: memref<1x128xf32, #tpu.memory_space<vmem>>, %arg5: memref<1x128xf32, #tpu.memory_space<vmem>>, %arg6: memref<1x1xf32, #tpu.memory_space<smem>>, %arg7: memref<32x128xf32, #tpu.memory_space<vmem>>, %arg8: memref<32x128xf32, #tpu.memory_space<vmem>>) attributes {dimension_semantics = [#tpu.dimension_semantics<parallel>], iteration_bounds = array<i64: 1>, scalar_prefetch = 0 : i64, scratch_operands = 0 : i64, tpu.core_type = #tpu.core_type<tc>, window_params = [{transform_indices = @transform_0, window_bounds = array<i64: 32, 64>}, {transform_indices = @transform_1, window_bounds = array<i64: 32, 1>}, {pipeline_mode = #tpu.pipeline_mode<synchronous>, transform_indices = @transform_2, window_bounds = array<i64: 64, 128>}, {pipeline_mode = #tpu.pipeline_mode<synchronous>, transform_indices = @transform_3, window_bounds = array<i64: 1, 128>}, {pipeline_mode = #tpu.pipeline_mode<synchronous>, transform_indices = @transform_4, window_bounds = array<i64: 1, 128>}, {transform_indices = @transform_5, window_bounds = array<i64: 1, 1>}, {transform_indices = @transform_6, window_bounds = array<i64: 32, 128>}, {transform_indices = @transform_7, window_bounds = array<i64: 32, 128>}]} {
    %c0 = arith.constant 0 : index
    %c0_0 = arith.constant 0 : index
    %0 = vector.load %arg1[%c0, %c0_0] : memref<32x64xf32, #tpu.memory_space<vmem>>, vector<32x64xf32>
    %c0_1 = arith.constant 0 : index
    %c0_2 = arith.constant 0 : index
    %1 = vector.load %arg3[%c0_1, %c0_2] : memref<64x128xf32, #tpu.memory_space<vmem>>, vector<64x128xf32>
    %cst = arith.constant dense<0.000000e+00> : vector<32x128xf32>
    %2 = tpu.matmul %0, %1, %cst {dimension_numbers = #tpu.dot_dimension_numbers<[1], [0], [0], [1], [0, 0, 1, 1], [], []>} : vector<32x64xf32>, vector<64x128xf32>, vector<32x128xf32> -> vector<32x128xf32>
    %c0_3 = arith.constant 0 : index
    %c0_4 = arith.constant 0 : index
    %3 = vector.load %arg4[%c0_3, %c0_4] : memref<1x128xf32, #tpu.memory_space<vmem>>, vector<1x128xf32>
    %4 = vector.broadcast %3 : vector<1x128xf32> to vector<32x128xf32>
    %5 = arith.addf %2, %4 : vector<32x128xf32>
    %cst_5 = arith.constant 0.000000e+00 : f32
    %6 = vector.broadcast %cst_5 : f32 to vector<32x128xf32>
    %7 = arith.maximumf %5, %6 : vector<32x128xf32>
    %c0_6 = arith.constant 0 : index
    %c0_7 = arith.constant 0 : index
    %8 = vector.load %arg7[%c0_6, %c0_7] : memref<32x128xf32, #tpu.memory_space<vmem>>, vector<32x128xf32>
    tpu.vector_store %arg7[%c0_6, %c0_7], %7 {strides = array<i32>} : memref<32x128xf32, #tpu.memory_space<vmem>>, vector<32x128xf32>,
    %c0_8 = arith.constant 0 : index
    %c0_9 = arith.constant 0 : index
    %9 = vector.load %arg5[%c0_8, %c0_9] : memref<1x128xf32, #tpu.memory_space<vmem>>, vector<1x128xf32>
    %10 = vector.broadcast %9 : vector<1x128xf32> to vector<32x128xf32>
    %11 = arith.mulf %7, %10 : vector<32x128xf32>
    %cst_10 = arith.constant dense<0.000000e+00> : vector<32xf32>
    %12 = vector.multi_reduction <add>, %11, %cst_10 [1] : vector<32x128xf32> to vector<32xf32>
    %13 = vector.shape_cast %12 : vector<32xf32> to vector<32x1xf32>
    %c0_11 = arith.constant 0 : index
    %c0_12 = arith.constant 0 : index
    %14 = memref.load %arg6[%c0_11, %c0_12] : memref<1x1xf32, #tpu.memory_space<smem>>
    %15 = vector.broadcast %14 : f32 to vector<32x1xf32>
    %16 = arith.addf %13, %15 : vector<32x1xf32>
    %c0_13 = arith.constant 0 : index
    %c0_14 = arith.constant 0 : index
    %17 = vector.load %arg2[%c0_13, %c0_14] : memref<32x1xf32, #tpu.memory_space<vmem>>, vector<32x1xf32>
    %18 = math.absf %16 : vector<32x1xf32>
    %cst_15 = arith.constant 0.000000e+00 : f32
    %19 = vector.broadcast %cst_15 : f32 to vector<32x1xf32>
    %20 = arith.subf %19, %18 : vector<32x1xf32>
    %21 = math.exp %20 : vector<32x1xf32>
    %cst_16 = arith.constant 1.000000e+00 : f32
    %22 = vector.broadcast %cst_16 : f32 to vector<32x1xf32>
    %23 = arith.addf %22, %21 : vector<32x1xf32>
    %24 = tpu.reciprocal %23 : vector<32x1xf32> -> vector<32x1xf32>
    %cst_17 = arith.constant 0.000000e+00 : f32
    %25 = vector.broadcast %cst_17 : f32 to vector<32x1xf32>
    %26 = arith.cmpf oge, %16, %25 : vector<32x1xf32>
    %27 = arith.mulf %21, %24 : vector<32x1xf32>
    %28 = arith.select %26, %24, %27 : vector<32x1xi1>, vector<32x1xf32>
    %cst_18 = arith.constant 0.000000e+00 : f32
    %29 = vector.broadcast %cst_18 : f32 to vector<32x1xf32>
    %30 = arith.maximumf %16, %29 : vector<32x1xf32>
    %31 = arith.mulf %16, %17 : vector<32x1xf32>
    %32 = arith.subf %30, %31 : vector<32x1xf32>
    %33 = math.log1p %21 : vector<32x1xf32>
    %34 = arith.addf %32, %33 : vector<32x1xf32>
    %35 = tpu.iota {dimensions = array<i32: 1>} : vector<32x128xi32>
    %c0_i32 = arith.constant 0 : i32
    %36 = vector.broadcast %c0_i32 : i32 to vector<32x128xi32>
    %37 = arith.cmpi eq, %35, %36 : vector<32x128xi32>
    %c1_i32 = arith.constant 1 : i32
    %38 = vector.broadcast %c1_i32 : i32 to vector<32x128xi32>
    %39 = arith.cmpi eq, %35, %38 : vector<32x128xi32>
    %c2_i32 = arith.constant 2 : i32
    %40 = vector.broadcast %c2_i32 : i32 to vector<32x128xi32>
    %41 = arith.cmpi eq, %35, %40 : vector<32x128xi32>
    %cst_19 = arith.constant 0.000000e+00 : f32
    %42 = vector.shape_cast %34 : vector<32x1xf32> to vector<32x1xf32>
    %43 = vector.broadcast %42 : vector<32x1xf32> to vector<32x128xf32>
    %44 = vector.broadcast %cst_19 : f32 to vector<32x128xf32>
    %45 = arith.select %41, %43, %44 : vector<32x128xi1>, vector<32x128xf32>
    %46 = vector.shape_cast %28 : vector<32x1xf32> to vector<32x1xf32>
    %47 = vector.broadcast %46 : vector<32x1xf32> to vector<32x128xf32>
    %48 = arith.select %39, %47, %45 : vector<32x128xi1>, vector<32x128xf32>
    %49 = vector.shape_cast %16 : vector<32x1xf32> to vector<32x1xf32>
    %50 = vector.broadcast %49 : vector<32x1xf32> to vector<32x128xf32>
    %51 = arith.select %37, %50, %48 : vector<32x128xi1>, vector<32x128xf32>
    %c0_20 = arith.constant 0 : index
    %c0_21 = arith.constant 0 : index
    %52 = vector.load %arg8[%c0_20, %c0_21] : memref<32x128xf32, #tpu.memory_space<vmem>>, vector<32x128xf32>
    tpu.vector_store %arg8[%c0_20, %c0_21], %51 {strides = array<i32>} : memref<32x128xf32, #tpu.memory_space<vmem>>, vector<32x128xf32>,
    return
  }
  func.func @transform_0(%arg0: i32) -> (i32, i32) {
    %c0_i32 = arith.constant 0 : i32
    %c0_i32_0 = arith.constant 0 : i32
    return %arg0, %c0_i32 : i32, i32
  }
  func.func @transform_1(%arg0: i32) -> (i32, i32) {
    %c0_i32 = arith.constant 0 : i32
    %c0_i32_0 = arith.constant 0 : i32
    return %arg0, %c0_i32 : i32, i32
  }
  func.func @transform_2(%arg0: i32) -> (i32, i32) {
    %c0_i32 = arith.constant 0 : i32
    %c0_i32_0 = arith.constant 0 : i32
    %c0_i32_1 = arith.constant 0 : i32
    return %c0_i32, %c0_i32_0 : i32, i32
  }
  func.func @transform_3(%arg0: i32) -> (i32, i32) {
    %c0_i32 = arith.constant 0 : i32
    %c0_i32_0 = arith.constant 0 : i32
    %c0_i32_1 = arith.constant 0 : i32
    return %c0_i32, %c0_i32_0 : i32, i32
  }
  func.func @transform_4(%arg0: i32) -> (i32, i32) {
    %c0_i32 = arith.constant 0 : i32
    %c0_i32_0 = arith.constant 0 : i32
    %c0_i32_1 = arith.constant 0 : i32
    return %c0_i32, %c0_i32_0 : i32, i32
  }
  func.func @transform_5(%arg0: i32) -> (i32, i32) {
    %c0_i32 = arith.constant 0 : i32
    %c0_i32_0 = arith.constant 0 : i32
    %c0_i32_1 = arith.constant 0 : i32
    return %c0_i32, %c0_i32_0 : i32, i32
  }
  func.func @transform_6(%arg0: i32) -> (i32, i32) {
    %c0_i32 = arith.constant 0 : i32
    %c0_i32_0 = arith.constant 0 : i32
    return %arg0, %c0_i32 : i32, i32
  }
  func.func @transform_7(%arg0: i32) -> (i32, i32) {
    %c0_i32 = arith.constant 0 : i32
    %c0_i32_0 = arith.constant 0 : i32
    return %arg0, %c0_i32 : i32, i32
  }
}

</mosaic_0001>

<bundles_post_ra>
// kernel: hia_predict_forward.1
= control target key start
LH: loop header
LB: loop body
LE: loop exit
PB: predicated region body
PF: predicated region fallthrough
CT: control target
= control target key end

     0   :  { %14 = vsyncpa [#allocation4], 0  ;;  %s671_s0 = inlined_call_operand.vmem [shape: f32[32,64], index: 0, kind: input, shape index: {}]   ;;  %s672_s1 = inlined_call_operand.vmem [shape: f32[32,1], index: 1, kind: input, shape index: {}]   ;;  %s673_s2 = inlined_call_operand.hbm [shape: f32[64,128], index: 2, kind: input, shape index: {}]   ;;  %s674_s3 = inlined_call_operand.vmem [shape: f32[1,128], index: 3, kind: input, shape index: {}]   ;;  %s675_s4 = inlined_call_operand.vmem [shape: f32[1,128], index: 4, kind: input, shape index: {}]   ;;  %s676_s5 = inlined_call_operand.<no memory space> [shape: f32[1,1], index: 5, kind: input, shape index: {}]   ;;  %s677_s6 = inlined_call_operand.hbm [shape: f32[32,128], index: 6, kind: output, shape index: {0}]   ;;  %s678_s7 = inlined_call_operand.vmem [shape: f32[32,128], index: 7, kind: output, shape index: {1}]  }
   0x1   :  { %15 = vsyncpa [#allocation5], 0  ;;  %s488_s24 = smov [#allocation3]   ;;  %s440_s28 = scalar_lea.hbm %s673_s2, 1024 }
   0x2   :  { %s25_s25 = sshll.u32 %s488_s24, 4  ;;  %p441_p0 = scmp.ne.s32.totalorder %s673_s2, %s440_s28  ;;  %s26_s25 = int_to_ptr.vmem [resolvable:$true] %s25_s25 }
   0x3   :  { %p444_p1 = scmp.lt.u32.totalorder %s440_s28, %s673_s2 }
   0x5   :  { %p446_p2 = pnand %p444_p1, %p441_p0 }
   0x7   :  { %449 = shalt.err (!%p446_p2)
}
   0x8   :  { %s450_s10 = scalar_lea.vmem %s26_s25, 1024  ;;  %p455_p4 = scmp.lt.s32.totalorder %s26_s25, %s26_s25 }
   0x9   :  { %p451_p3 = scmp.ne.s32.totalorder %s26_s25, %s450_s10  ;;  %p456_p5 = scmp.lt.s32.totalorder %s450_s10, %s450_s10 }
   0xb   :  { %p457_p6 = por %p456_p5, %p455_p4 }
   0xd   :  { %p458_p7 = pnand %p457_p6, %p451_p3 }
   0xf   :  { %461 = shalt.err (!%p458_p7)
}
  0x10   :  { %s489_s11 = smov 128   ;;  %s490_s12 = smov 8  }
  0x11   :  { %31 = dma.hbm_to_vmem [thread:$0]  %s673_s2, 1024, %s26_s25, [#allocation4], %s489_s11, %s489_s11, %s490_s12  }
  0x12   :  { %484 = dma.done.wait [#allocation4], 1024  }
  0x13   :  { %485 = vsyncadd [#allocation4], 4294966272  ;;  %v45_v0 = vld [vmem:[#allocation3] sm:$0xff]  ;;  %v46_v1 = vld [vmem:[#allocation3 + $0x8] sm:$0xff]  ;;  %vm60_vm0 = vcmask 523264   ;;  %v491_v34 = vmov 0   ;;  %v186_v35 = vstv %s676_s5 }
  0x14   :  { %v47_v2 = vld [vmem:[#allocation3 + $0x10] sm:$0xff]  ;;  %v385_v3 = vpack.c.bf16 %v46_v1, %v45_v0  ;;  %v48_v4 = vld [vmem:[#allocation3 + $0x18] sm:$0xff]  ;;  %v49_v6 = vld [vmem:[#allocation3 + $0x20] sm:$0xff]  ;;  %414 = vset.pattern.permute.xlu0 %v491_v34  ;;  %415 = vset.pattern.permute.xlu1 %v491_v34 }
  0x15   :  { %v389_v5 = vpack.c.bf16 %v48_v4, %v47_v2  ;;  %v50_v7 = vld [vmem:[#allocation3 + $0x28] sm:$0xff]  ;;  %v41_v8 = vld [vmem:[%s671_s0] sm:$0xff]  ;;  %v43_v9 = vld [vmem:[%s671_s0 + $0x10] sm:$0xff] }
  0x16   :  { %386 = vmatprep.subr.bf16.mxu0 %v385_v3  ;;  %401 = vmatprep.subr.bf16.mxu1 %v385_v3  ;;  %v393_v10 = vpack.c.bf16 %v50_v7, %v49_v6  ;;  %v51_v11 = vld [vmem:[#allocation3 + $0x30] sm:$0xff]  ;;  %v52_v12 = vld [vmem:[#allocation3 + $0x38] sm:$0xff]  ;;  %v42_v14 = vld [vmem:[%s671_s0 + $0x8] sm:$0xff] }
  0x17   :  { %388 = vmatpush3.bf16.msra.mxu0 %v385_v3  ;;  %405 = vmatpush3.bf16.msra.mxu1 %v385_v3  ;;  %v397_v13 = vpack.c.bf16 %v52_v12, %v51_v11  ;;  %v44_v15 = vld [vmem:[%s671_s0 + $0x18] sm:$0xff]  ;;  %v345_v16 = vld [vmem:[%s674_s3] ss:$0 sm:$0xff] }
  0x18   :  { %390 = vmatprep.subr.bf16.mxu0 %v389_v5  ;;  %402 = vmatprep.subr.bf16.mxu1 %v389_v5  ;;  %v350_v27 = vld [vmem:[%s675_s4] ss:$0 sm:$0xff] }
  0x19   :  { %379 = vmatprep.mubr.msk.f32.mxu0 %vm60_vm0, %v41_v8  ;;  %382 = vmatprep.mubr.msk.f32.mxu1 %vm60_vm0, %v43_v9  ;;  %v191_v0 = vld [vmem:[%s672_s1] sm:$0xff] }
  0x1b   :  { %392 = vmatpush3.bf16.msra.mxu0 %v389_v5  ;;  %406 = vmatpush3.bf16.msra.mxu1 %v389_v5  ;;  %v192_v5 = vld [vmem:[%s672_s1 + $0x8] sm:$0xff] }
  0x1c   :  { %394 = vmatprep.subr.bf16.mxu0 %v393_v10  ;;  %403 = vmatprep.subr.bf16.mxu1 %v393_v10 }
  0x1f   :  { %396 = vmatpush3.bf16.msra.mxu0 %v393_v10  ;;  %407 = vmatpush3.bf16.msra.mxu1 %v393_v10 }
  0x20   :  { %398 = vmatprep.subr.bf16.mxu0 %v397_v13  ;;  %404 = vmatprep.subr.bf16.mxu1 %v397_v13 }
  0x23   :  { %400 = vmatpush3.bf16.msra.mxu0 %v397_v13  ;;  %408 = vmatpush3.bf16.msra.mxu1 %v397_v13 }
  0x26   :  { %380 = vmatmul.mubr.msk.f32.vlgmr.msra.gmra.mrb[0].mxu0 %vm60_vm0, %v42_v14  ;;  %383 = vmatmul.mubr.msk.f32.vlgmr.msra.gmra.mrb[0].mxu1 %vm60_vm0, %v44_v15 }
  0xf9   :  { %v381_v17 = vpop.f32.mrb[0].mxu0  ;;  %v384_v18 = vpop.f32.mrb[0].mxu1 }
  0xfa   :  { %v145_v19 = vadd.f32 %v381_v17, %v345_v16  ;;  %v155_v20 = vadd.f32 %v384_v18, %v345_v16  ;;  %v139_v21 = vpop.f32.mrb[1].mxu0  ;;  %v149_v22 = vpop.f32.mrb[1].mxu1 }
  0xfb   :  { %v140_v23 = vadd.f32 %v345_v16, %v139_v21  ;;  %v150_v24 = vadd.f32 %v345_v16, %v149_v22 }
  0xfc   :  { %v159_v25 = vmax.f32 %v145_v19, 0.0  ;;  %v161_v26 = vmax.f32 %v155_v20, 0.0  ;;  %v193_v20 = vld [vmem:[%s672_s1 + $0x10] sm:$0xff] }
  0xfd   :  { %v158_v28 = vmax.f32 %v140_v23, 0.0  ;;  %v160_v29 = vmax.f32 %v150_v24, 0.0 }
  0xfe   :  { %163 = vst [vmem:[#allocation6 + $0x8] sm:$0xff] %v159_v25  ;;  %165 = vst [vmem:[#allocation6 + $0x18] sm:$0xff] %v161_v26  ;;  %v176_v32 = vmul.f32 %v350_v27, %v161_v26  ;;  %v174_v33 = vmul.f32 %v350_v27, %v159_v25 }
  0xff   :  { %162 = vst [vmem:[#allocation6] sm:$0xff] %v158_v28  ;;  %164 = vst [vmem:[#allocation6 + $0x10] sm:$0xff] %v160_v29  ;;  %v175_v30 = vmul.f32 %v350_v27, %v160_v29  ;;  %v173_v31 = vmul.f32 %v350_v27, %v158_v28 }
 0x101   :  { %181 = vadd.xlane.f32.xlu1 %v175_v30  ;;  %177 = vadd.xlane.f32.xlu0 %v173_v31 }
 0x105   :  { %183 = vadd.xlane.f32.xlu1 %v176_v32  ;;  %179 = vadd.xlane.f32.xlu0 %v174_v33 }
 0x18e   :  { %v182_v36 = vpop.xlane.xlu1 %181  ;;  %v178_v37 = vpop.xlane.xlu0 %177 }
 0x18f   :  { %v573_v38 = vadd.f32 %v186_v35, %v182_v36  ;;  %v575_v39 = vadd.f32 %v186_v35, %v178_v37 }
 0x191   :  { %v197_v40 = vand.u32 2147483647, %v573_v38  ;;  %v195_v41 = vand.u32 2147483647, %v575_v39  ;;  %v231_v2 = vmax.f32 %v575_v39, 0.0  ;;  %v235_v3 = vmul.f32 %v191_v0, %v575_v39 }
 0x192   :  { %v184_v42 = vpop.xlane.xlu1 %183  ;;  %v180_v43 = vpop.xlane.xlu0 %179  ;;  %v233_v9 = vmax.f32 %v573_v38, 0.0  ;;  %vm221_vm1 = vcmp.ge.f32.partialorder %v573_v38, 0.0  ;;  %vm219_vm3 = vcmp.ge.f32.partialorder %v575_v39, 0.0  ;;  %v237_v30 = vmul.f32 %v193_v20, %v573_v38 }
 0x193   :  { %v201_v44 = vsub.f32 0.0, %v197_v40  ;;  %v199_v45 = vsub.f32 0.0, %v195_v41  ;;  %v579_v46 = vadd.f32 %v186_v35, %v184_v42  ;;  %v581_v47 = vadd.f32 %v186_v35, %v180_v43 }
 0x194   :  { %v239_v12 = vsub.f32 %v231_v2, %v235_v3 }
 0x195   :  { %v207_v48 = vmul.f32 1.442695, %v201_v44  ;;  %v203_v49 = vmul.f32 1.442695, %v199_v45  ;;  %v198_v50 = vand.u32 2147483647, %v579_v46  ;;  %v236_v13 = vmul.f32 %v192_v5, %v581_v47 }
 0x196   :  { %v196_v51 = vand.u32 2147483647, %v581_v47  ;;  %v232_v18 = vmax.f32 %v581_v47, 0.0  ;;  %vm220_vm4 = vcmp.ge.f32.partialorder %v581_v47, 0.0  ;;  %vm222_vm6 = vcmp.ge.f32.partialorder %v579_v46, 0.0  ;;  %v194_v45 = vld [vmem:[%s672_s1 + $0x18] sm:$0xff] }
 0x197   :  { %416 = vpow2.f32 %v207_v48  ;;  %v202_v52 = vsub.f32 0.0, %v198_v50  ;;  %s492_s1 = smov [#allocation6]  }
 0x198   :  { %418 = vpow2.f32 %v203_v49  ;;  %v200_v53 = vsub.f32 0.0, %v196_v51  ;;  %v240_v40 = vsub.f32 %v232_v18, %v236_v13  ;;  %s329_s9 = sshll.u32 %s492_s1, 4  ;;  %s330_s9 = int_to_ptr.vmem [resolvable:$true] %s329_s9 }
 0x199   :  { %v209_v54 = vmul.f32 1.442695, %v202_v52  ;;  %s462_s10 = scalar_lea.vmem %s330_s9, 512  ;;  %p467_p9 = scmp.lt.s32.totalorder %s330_s9, %s330_s9 }
 0x19a   :  { %v205_v55 = vmul.f32 1.442695, %v200_v53  ;;  %p463_p8 = scmp.ne.s32.totalorder %s330_s9, %s462_s10  ;;  %p468_p10 = scmp.lt.s32.totalorder %s462_s10, %s462_s10 }
 0x19b   :  { %420 = vpow2.f32 %v209_v54 }
 0x19c   :  { %422 = vpow2.f32 %v205_v55  ;;  %p469_p11 = por %p468_p10, %p467_p9 }
 0x19e   :  { %p470_p12 = pnand %p469_p11, %p463_p8 }
 0x1a1   :  { %v585_v56 = vpop.eup %416 }
 0x1a2   :  { %v419_v57 = vpop.eup %418  ;;  %v213_v58 = vadd.f32 1.0, %v585_v56  ;;  %v264_v10 = vmul.f32 -0.5, %v585_v56  ;;  %v267_v31 = vand.u32 2147483647, %v585_v56 }
 0x1a3   :  { %v211_v59 = vadd.f32 1.0, %v419_v57  ;;  %v246_v1 = vmul.f32 -0.5, %v419_v57  ;;  %v249_v7 = vand.u32 2147483647, %v419_v57 }
 0x1a4   :  { %424 = vrcp.f32 %v213_v58  ;;  %v265_v26 = vadd.f32 1.0, %v264_v10  ;;  %vm268_vm7 = vcmp.lt.f32.partialorder %v267_v31, 0.0004427343 }
 0x1a5   :  { %v588_v60 = vpop.eup %420  ;;  %426 = vlog2.f32 %v211_v59  ;;  %v247_v4 = vadd.f32 1.0, %v246_v1  ;;  %vm250_vm2 = vcmp.lt.f32.partialorder %v249_v7, 0.0004427343 }
 0x1a6   :  { %v423_v61 = vpop.eup %422  ;;  %428 = vrcp.f32 %v211_v59  ;;  %v214_v63 = vadd.f32 1.0, %v588_v60  ;;  %v273_v27 = vmul.f32 -0.5, %v588_v60  ;;  %v266_v44 = vmul.f32 %v585_v56, %v265_v26 }
 0x1a7   :  { %v212_v62 = vadd.f32 1.0, %v423_v61  ;;  %430 = vlog2.f32 %v213_v58  ;;  %v255_v6 = vmul.f32 -0.5, %v423_v61  ;;  %v248_v17 = vmul.f32 %v419_v57, %v247_v4 }
 0x1a8   :  { %v258_v21 = vand.u32 2147483647, %v423_v61  ;;  %v274_v48 = vadd.f32 1.0, %v273_v27  ;;  %v276_v51 = vand.u32 2147483647, %v588_v60  ;;  %v238_v58 = vmul.f32 %v194_v45, %v579_v46 }
 0x1a9   :  { %432 = vlog2.f32 %v212_v62  ;;  %v256_v19 = vadd.f32 1.0, %v255_v6 }
 0x1aa   :  { %434 = vrcp.f32 %v212_v62  ;;  %vm259_vm5 = vcmp.lt.f32.partialorder %v258_v21, 0.0004427343  ;;  %v275_v59 = vmul.f32 %v588_v60, %v274_v48  ;;  %vm277_vm8 = vcmp.lt.f32.partialorder %v276_v51, 0.0004427343 }
 0x1ab   :  { %436 = vrcp.f32 %v214_v63  ;;  %v257_v35 = vmul.f32 %v423_v61, %v256_v19 }
 0x1ac   :  { %438 = vlog2.f32 %v214_v63 }
 0x1ae   :  { %v425_v8 = vpop.eup %424 }
 0x1af   :  { %v427_v11 = vpop.eup %426  ;;  %v225_v14 = vmul.f32 %v425_v8, %v585_v56  ;;  %v234_v56 = vmax.f32 %v579_v46, 0.0 }
 0x1b0   :  { %v429_v15 = vpop.eup %428  ;;  %v245_v16 = vmul.f32 0.6931472, %v427_v11 }
 0x1b1   :  { %v223_v22 = vmul.f32 %v429_v15, %v419_v57  ;;  %v608_v23 = vsel %vm221_vm1, %v425_v8, %v225_v14  ;;  %v431_v24 = vpop.eup %430  ;;  %v241_v57 = vsub.f32 %v233_v9, %v237_v30  ;;  %v242_v63 = vsub.f32 %v234_v56, %v238_v58 }
 0x1b2   :  { %v251_v25 = vsel %vm250_vm2, %v248_v17, %v245_v16  ;;  %v263_v36 = vmul.f32 0.6931472, %v431_v24 }
 0x1b3   :  { %v433_v28 = vpop.eup %432  ;;  %v279_v29 = vadd.f32 %v251_v25, %v239_v12  ;;  %v227_v32 = vsel %vm219_vm3, %v429_v15, %v223_v22 }
 0x1b4   :  { %v435_v33 = vpop.eup %434  ;;  %v254_v34 = vmul.f32 0.6931472, %v433_v28  ;;  %v269_v53 = vsel %vm268_vm7, %v266_v44, %v263_v36 }
 0x1b5   :  { %v437_v37 = vpop.eup %436  ;;  %290 = vperm.xlu0 %414, %v279_v29   ;;  %v224_v41 = vmul.f32 %v435_v33, %v423_v61  ;;  %v281_v61 = vadd.f32 %v269_v53, %v241_v57 }
 0x1b6   :  { %v439_v42 = vpop.eup %438  ;;  %v260_v43 = vsel %vm259_vm5, %v257_v35, %v254_v34  ;;  %v226_v49 = vmul.f32 %v437_v37, %v588_v60 }
 0x1b7   :  { %v280_v50 = vadd.f32 %v260_v43, %v240_v40  ;;  %v228_v52 = vsel %vm220_vm4, %v435_v33, %v224_v41  ;;  %v272_v54 = vmul.f32 0.6931472, %v439_v42 }
 0x1b8   :  { %v230_v55 = vsel %vm222_vm6, %v437_v37, %v226_v49 }
 0x1b9   :  { %295 = vperm.xlu1 %415, %v280_v50   ;;  %v278_v62 = vsel %vm277_vm8, %v275_v59, %v272_v54 }
 0x1ba   :  { %v282_v0 = vadd.f32 %v278_v62, %v242_v63 }
 0x1bd   :  { %300 = vperm.xlu1 %415, %v281_v61  }
 0x1c1   :  { %305 = vperm.xlu1 %415, %v282_v0  }
 0x1c2   :  { %473 = shalt.err (!%p470_p12)
}
 0x1c3   :  { %s474_s15 = scalar_lea.hbm %s677_s6, 512 }
 0x1c4   :  { %p475_p13 = scmp.ne.s32.totalorder %s677_s6, %s474_s15  ;;  %p478_p0 = scmp.lt.u32.totalorder %s474_s15, %s677_s6 }
 0x1c6   :  { %p480_p1 = pnand %p478_p0, %p475_p13 }
 0x1c8   :  { %483 = shalt.err (!%p480_p1)
}
 0x1c9   :  { %335 = dma.vmem_to_hbm [thread:$0]  %s330_s9, 512, %s677_s6, [#allocation5], %s489_s11, %s489_s11, %s490_s12   ;;  %v283_v60 = vlaneseq }
 0x1cb   :  { %v284_v1 = vand.u32 127, %v283_v60 }
 0x1cd   :  { %vm287_vm9 = vcmp.eq.s32.totalorder %v284_v1, 2  ;;  %vm286_vm10 = vcmp.eq.s32.totalorder %v284_v1, 1  ;;  %vm285_vm11 = vcmp.eq.s32.totalorder %v284_v1, 0 }
 0x234   :  { %v291_v2 = vpop.permute.xlu0 %290 }
 0x235   :  { %v308_v3 = vsel %vm287_vm9, %v291_v2, 0.0 }
 0x236   :  { %v312_v4 = vsel %vm286_vm10, %v227_v32, %v308_v3 }
 0x237   :  { %v316_v5 = vsel %vm285_vm11, %v575_v39, %v312_v4 }
 0x238   :  { %320 = vst [vmem:[%s678_s7] sm:$0xff] %v316_v5  ;;  %v296_v6 = vpop.permute.xlu1 %295 }
 0x239   :  { %v309_v7 = vsel %vm287_vm9, %v296_v6, 0.0 }
 0x23a   :  { %v313_v8 = vsel %vm286_vm10, %v228_v52, %v309_v7 }
 0x23b   :  { %v317_v9 = vsel %vm285_vm11, %v581_v47, %v313_v8 }
 0x23c   :  { %321 = vst [vmem:[%s678_s7 + $0x8] sm:$0xff] %v317_v9  ;;  %v301_v10 = vpop.permute.xlu1 %300 }
 0x23d   :  { %v310_v11 = vsel %vm287_vm9, %v301_v10, 0.0 }
 0x23e   :  { %v314_v39 = vsel %vm286_vm10, %v608_v23, %v310_v11 }
 0x23f   :  { %v318_v12 = vsel %vm285_vm11, %v573_v38, %v314_v39 }
 0x240   :  { %322 = vst [vmem:[%s678_s7 + $0x10] sm:$0xff] %v318_v12  ;;  %v306_v13 = vpop.permute.xlu1 %305 }
 0x241   :  { %v311_v47 = vsel %vm287_vm9, %v306_v13, 0.0 }
 0x242   :  { %v315_v14 = vsel %vm286_vm10, %v230_v55, %v311_v47 }
 0x243   :  { %v319_v15 = vsel %vm285_vm11, %v579_v46, %v315_v14 }
 0x244   :  { %323 = vst [vmem:[%s678_s7 + $0x18] sm:$0xff] %v319_v15 }
 0x245   :  { %486 = dma.done.wait [#allocation5], 512  }
 0x246   :  { %487 = vsyncadd [#allocation5], 4294966784 }
 0x247   :  { %343 = vsyncpa [#allocation4], 1 }
 0x248   :  { %344 = vsyncpa [#allocation5], 1 }

</bundles_post_ra>
